<compile_context>
chip_gen: v7x
topology: tpu7x:2x2x1
jax: 0.10.0
libtpu: 0.0.40
codegen_flags: <defaults>
</compile_context>

<pallas_src>
import numpy as np
import jax
import jax.numpy as jnp
from jax.experimental import pallas as pl
from jax.experimental.pallas import tpu as pltpu

# ---- static model config (small, consistent with the module defaults) ----
DIM = 8      # latent dim
NH = 32      # hidden width of each ARMLP/MADE
T = 3        # number of flow steps per NIAFEncoder
S = 1        # ensemble size (module hardcodes a single flow used S times)


# ------------------------- parameter construction -------------------------
def _build_masks(dim, nh):
    """Deterministic MADE autoregressive masks (natural ordering)."""
    m_in = np.arange(dim)                          # input degrees 0..dim-1
    m_h = np.arange(nh) % max(dim - 1, 1)          # hidden degrees in [0, dim-2]
    mask_in = (m_in[:, None] <= m_h[None, :]).astype(np.float32)   # (dim, nh)
    mask_hh = (m_h[:, None] <= m_h[None, :]).astype(np.float32)    # (nh, nh)
    mask_out = (m_h[:, None] < m_in[None, :]).astype(np.float32)   # (nh, dim)
    return mask_in, mask_hh, mask_out


def init_params(key, dim=DIM, nh=NH, num_flows=T):
    """Synthetic deterministic parameters for T masked 4-layer MLPs, stored in
    TRANSPOSED layout (features on sublanes, batch rows on lanes):
        w1t : (T, nh, dim)       bh : (T, 3, nh, 1)   (b1, b2, b3 as column vecs)
        wht : (T, 2, nh, nh)     b4 : (T, 2*dim, 1)
        w4t : (T, 2*dim, nh)     (s-half = rows [:dim], m-half = rows [dim:])
    Row-layout equivalent per flow: dim->nh->nh->nh->2*dim, ReLU, masked weights.
    """
    mask_in, mask_hh, mask_out = _build_masks(dim, nh)
    keys = jax.random.split(key, num_flows * 8)

    def rnd(k, shape, scale):
        return scale * jax.random.normal(k, shape, dtype=jnp.float32)

    w1t, wht, w4t, bh, b4 = [], [], [], [], []
    for t in range(num_flows):
        k = keys[t * 8:(t + 1) * 8]
        w1t.append(rnd(k[0], (nh, dim), 0.3) * mask_in.T)
        w2 = rnd(k[2], (nh, nh), 0.2) * mask_hh
        w3 = rnd(k[4], (nh, nh), 0.2) * mask_hh
        wht.append(jnp.stack([w2.T, w3.T], axis=0))
        w4 = rnd(k[6], (nh, 2 * dim), 0.2) * np.concatenate([mask_out, mask_out], axis=1)
        w4t.append(w4.T)                                   # (2*dim, nh)
        bh.append(jnp.stack([rnd(k[1], (nh, 1), 0.1),
                             rnd(k[3], (nh, 1), 0.1),
                             rnd(k[5], (nh, 1), 0.1)], axis=0))
        b4.append(rnd(k[7], (2 * dim, 1), 0.1))

    stk = lambda xs: jnp.stack(xs, axis=0)
    return dict(w1t=stk(w1t), wht=stk(wht), w4t=stk(w4t), bh=stk(bh), b4=stk(b4))


# ------------------------------ Pallas kernel ------------------------------
def iaf_kernel(z_ref, w1_ref, wh_ref, w4_ref, bh_ref, b4_ref, zout_ref, ld_ref):
    # z is transposed: features on sublanes (DIM=8 rows), batch rows on lanes (TM).
    z = z_ref[...].astype(jnp.float32)                 # (DIM, TM)
    sp_acc = jnp.zeros_like(z)                         # (DIM, TM) softplus accumulator
    for t in range(T):                                 # static unroll over flows
        h = jnp.maximum(
            jnp.dot(w1_ref[t], z, preferred_element_type=jnp.float32) + bh_ref[t, 0], 0.0)
        h = jnp.maximum(
            jnp.dot(wh_ref[t, 0], h, preferred_element_type=jnp.float32) + bh_ref[t, 1], 0.0)
        h = jnp.maximum(
            jnp.dot(wh_ref[t, 1], h, preferred_element_type=jnp.float32) + bh_ref[t, 2], 0.0)
        # single merged output matmul -> (2*DIM, TM); s/m split is a sublane slice
        sm = jnp.dot(w4_ref[t], h, preferred_element_type=jnp.float32) + b4_ref[t]
        s = sm[:DIM, :]
        m = sm[DIM:, :]
        # sigmoid(s) and softplus(-s) share a single exp:  e = exp(-|s|)
        e = jnp.exp(-jnp.abs(s))
        inv = 1.0 / (1.0 + e)                          # exact divide (holds 1e-5 tol)
        std = jnp.where(s >= 0.0, inv, e * inv)        # == sigmoid(s)
        z = m + std * (z - m)                          # == std*z + (1-std)*m
        # -log(sigmoid(s)) == softplus(-s); accumulate, reduce once after the loop
        sp_acc = sp_acc + (jnp.maximum(-s, 0.0) + jnp.log1p(e))
    zout_ref[...] = z.astype(zout_ref.dtype)                                   # (DIM, TM)
    ld_ref[...] = jnp.sum(sp_acc, axis=0, keepdims=True).astype(ld_ref.dtype)  # (1, TM)


def _full_spec(shape):
    # grid-invariant (weight) operand: single block covering the whole array
    return pl.BlockSpec(shape, lambda i: (0,) * len(shape))


def niaf_encode_pallas(z_flat, params, *, tm=4096):
    """T-step IAF encode on rows of z_flat: (M, dim) -> (M, dim), (M,).

    The batch axis M is mapped to the TPU lane axis: the kernel consumes z^T of
    shape (DIM, M) in lane-dense (DIM, tm) tiles.  tm is a multiple of 128,
    clamped to the problem; M is zero-padded up to a tile multiple and the pad
    is sliced off afterwards.  All weight slabs stay resident in VMEM.
    """
    M, dim = z_flat.shape
    assert dim == DIM
    zT = jnp.transpose(z_flat.astype(jnp.float32))     # (DIM, M)

    tm = max(128, min(tm, pl.cdiv(M, 128) * 128))
    assert tm % 128 == 0
    M_pad = pl.cdiv(M, tm) * tm
    if M_pad != M:
        zT = jnp.pad(zT, ((0, 0), (0, M_pad - M)))
    grid = (M_pad // tm,)

    in_specs = [
        pl.BlockSpec((DIM, tm), lambda i: (0, i)),        # z^T tile (lane-dense)
        _full_spec((T, NH, DIM)),                         # w1^T
        _full_spec((T, 2, NH, NH)),                       # w2^T & w3^T
        _full_spec((T, 2 * DIM, NH)),                     # merged w4^T (s|m rows)
        _full_spec((T, 3, NH, 1)),                        # b1..b3 (column vectors)
        _full_spec((T, 2 * DIM, 1)),                      # merged b4 (s|m rows)
    ]
    out_specs = [
        pl.BlockSpec((DIM, tm), lambda i: (0, i)),        # z_out^T  (lane-dense store)
        pl.BlockSpec((1, tm), lambda i: (0, i)),          # log_det  (lane-dense store)
    ]
    out_shape = [
        jax.ShapeDtypeStruct((DIM, M_pad), jnp.float32),
        jax.ShapeDtypeStruct((1, M_pad), jnp.float32),
    ]
    zT_out, ldT = pl.pallas_call(
        iaf_kernel,
        grid=grid,
        in_specs=in_specs,
        out_specs=out_specs,
        out_shape=out_shape,
        # NOTE: on v7x, pltpu.CORE_PARALLEL on this axis (with >=2 tiles) shards
        # row tiles across the two TensorCores; kept portable/"parallel" here.
        compiler_params=pltpu.CompilerParams(dimension_semantics=("parallel",)),
    )(zT, params["w1t"], params["wht"], params["w4t"], params["bh"], params["b4"])
    return jnp.transpose(zT_out[:, :M]), ldT[0, :M]


def ensemble_iafs_forward(z_s, params):
    """EnsembleIAFs.forward: z_s (B, N, dim) -> (zT_sj (B,N,S,dim), log_detT_sj (B,N,S))."""
    B, N, dim = z_s.shape
    z_flat = z_s.reshape(B * N, dim).astype(jnp.float32)
    z_out, ld = niaf_encode_pallas(z_flat, params)
    # the single flow in the ensemble is applied identically S times
    zT_sj = jnp.broadcast_to(z_out.reshape(B, N, 1, dim), (B, N, S, dim))
    log_detT_sj = jnp.broadcast_to(ld.reshape(B, N, 1), (B, N, S))
    return zT_sj, log_detT_sj


# ------------------------- pure-JAX reference check -------------------------
def _encode_ref(z_flat, params):
    z = z_flat
    ld = jnp.zeros((z.shape[0],), jnp.float32)
    for t in range(T):
        h = jax.nn.relu(z @ params["w1t"][t].T + params["bh"][t, 0].T)
        h = jax.nn.relu(h @ params["wht"][t, 0].T + params["bh"][t, 1].T)
        h = jax.nn.relu(h @ params["wht"][t, 1].T + params["bh"][t, 2].T)
        sm = h @ params["w4t"][t].T + params["b4"][t].T
        s, m = sm[:, :DIM], sm[:, DIM:]
        std = jax.nn.sigmoid(s)
        z = std * z + (1.0 - std) * m
        ld = ld - jnp.sum(jnp.log(std), axis=-1)
    return z, ld


def _check(z_s, params):
    B, N, _ = z_s.shape
    zT_sj, log_detT_sj = ensemble_iafs_forward(z_s, params)
    jax.block_until_ready((zT_sj, log_detT_sj))
    assert zT_sj.shape == (B, N, S, DIM)
    assert log_detT_sj.shape == (B, N, S)
    z_ref, ld_ref = _encode_ref(z_s.reshape(B * N, DIM).astype(jnp.float32), params)
    np.testing.assert_allclose(np.asarray(zT_sj[:, :, 0, :]).reshape(B * N, DIM),
                               np.asarray(z_ref), rtol=1e-5, atol=1e-5)
    np.testing.assert_allclose(np.asarray(log_detT_sj[:, :, 0]).reshape(B * N),
                               np.asarray(ld_ref), rtol=1e-5, atol=1e-5)


if __name__ == "__main__":
    key = jax.random.PRNGKey(0)
    k_param, k_z1, k_z2 = jax.random.split(key, 3)
    params = init_params(k_param)

    # small shape consistent with the module: z_s (B, N, dim)
    z_s = jax.random.normal(k_z1, (2, 8, DIM), dtype=jnp.float32)
    _check(z_s, params)

    # exercise the lane-padding path (B*N not a multiple of 128)
    z_s2 = jax.random.normal(k_z2, (3, 5, DIM), dtype=jnp.float32)
    _check(z_s2, params)

    print("KERNEL_OK")
</pallas_src>

<mosaic_0001>
module attributes {stable_mosaic.version = 11 : i64} {
  func.func @iaf_kernel(%arg0: i32, %arg1: memref<8x128xf32, #tpu.memory_space<vmem>>, %arg2: memref<3x32x8xf32, #tpu.memory_space<vmem>>, %arg3: memref<3x2x32x32xf32, #tpu.memory_space<vmem>>, %arg4: memref<3x16x32xf32, #tpu.memory_space<vmem>>, %arg5: memref<3x3x32x1xf32, #tpu.memory_space<vmem>>, %arg6: memref<3x16x1xf32, #tpu.memory_space<vmem>>, %arg7: memref<8x128xf32, #tpu.memory_space<vmem>>, %arg8: memref<1x128xf32, #tpu.memory_space<vmem>>) attributes {dimension_semantics = [#tpu.dimension_semantics<parallel>], iteration_bounds = array<i64: 1>, scalar_prefetch = 0 : i64, scratch_operands = 0 : i64, tpu.core_type = #tpu.core_type<tc>, window_params = [{transform_indices = @transform_0, window_bounds = array<i64: 8, 128>}, {pipeline_mode = #tpu.pipeline_mode<synchronous>, transform_indices = @transform_1, window_bounds = array<i64: 3, 32, 8>}, {pipeline_mode = #tpu.pipeline_mode<synchronous>, transform_indices = @transform_2, window_bounds = array<i64: 3, 2, 32, 32>}, {pipeline_mode = #tpu.pipeline_mode<synchronous>, transform_indices = @transform_3, window_bounds = array<i64: 3, 16, 32>}, {pipeline_mode = #tpu.pipeline_mode<synchronous>, transform_indices = @transform_4, window_bounds = array<i64: 3, 3, 32, 1>}, {pipeline_mode = #tpu.pipeline_mode<synchronous>, transform_indices = @transform_5, window_bounds = array<i64: 3, 16, 1>}, {transform_indices = @transform_6, window_bounds = array<i64: 8, 128>}, {transform_indices = @transform_7, window_bounds = array<i64: 1, 128>}]} {
    %c0 = arith.constant 0 : index
    %c0_0 = arith.constant 0 : index
    %0 = vector.load %arg1[%c0, %c0_0] : memref<8x128xf32, #tpu.memory_space<vmem>>, vector<8x128xf32>
    %cst = arith.constant 0.000000e+00 : f32
    %1 = vector.broadcast %cst : f32 to vector<8x128xf32>
    %c0_1 = arith.constant 0 : index
    %c0_2 = arith.constant 0 : index
    %c0_3 = arith.constant 0 : index
    %2 = vector.load %arg2[%c0_1, %c0_2, %c0_3] : memref<3x32x8xf32, #tpu.memory_space<vmem>>, vector<1x32x8xf32>
    %3 = vector.shape_cast %2 : vector<1x32x8xf32> to vector<32x8xf32>
    %cst_4 = arith.constant dense<0.000000e+00> : vector<32x128xf32>
    %4 = tpu.matmul %3, %0, %cst_4 {dimension_numbers = #tpu.dot_dimension_numbers<[1], [0], [0], [1], [0, 0, 1, 1], [], []>} : vector<32x8xf32>, vector<8x128xf32>, vector<32x128xf32> -> vector<32x128xf32>
    %c0_5 = arith.constant 0 : index
    %c0_6 = arith.constant 0 : index
    %c0_7 = arith.constant 0 : index
    %c0_8 = arith.constant 0 : index
    %5 = vector.load %arg5[%c0_5, %c0_6, %c0_7, %c0_8] : memref<3x3x32x1xf32, #tpu.memory_space<vmem>>, vector<1x1x32x1xf32>
    %6 = vector.shape_cast %5 : vector<1x1x32x1xf32> to vector<32x1xf32>
    %7 = vector.broadcast %6 : vector<32x1xf32> to vector<32x128xf32>
    %8 = arith.addf %4, %7 : vector<32x128xf32>
    %cst_9 = arith.constant 0.000000e+00 : f32
    %9 = vector.broadcast %cst_9 : f32 to vector<32x128xf32>
    %10 = arith.maximumf %8, %9 : vector<32x128xf32>
    %c0_10 = arith.constant 0 : index
    %c0_11 = arith.constant 0 : index
    %c0_12 = arith.constant 0 : index
    %c0_13 = arith.constant 0 : index
    %11 = vector.load %arg3[%c0_10, %c0_11, %c0_12, %c0_13] : memref<3x2x32x32xf32, #tpu.memory_space<vmem>>, vector<1x1x32x32xf32>
    %12 = vector.shape_cast %11 : vector<1x1x32x32xf32> to vector<32x32xf32>
    %cst_14 = arith.constant dense<0.000000e+00> : vector<32x128xf32>
    %13 = tpu.matmul %12, %10, %cst_14 {dimension_numbers = #tpu.dot_dimension_numbers<[1], [0], [0], [1], [0, 0, 1, 1], [], []>} : vector<32x32xf32>, vector<32x128xf32>, vector<32x128xf32> -> vector<32x128xf32>
    %c0_15 = arith.constant 0 : index
    %c1 = arith.constant 1 : index
    %c0_16 = arith.constant 0 : index
    %c0_17 = arith.constant 0 : index
    %14 = vector.load %arg5[%c0_15, %c1, %c0_16, %c0_17] : memref<3x3x32x1xf32, #tpu.memory_space<vmem>>, vector<1x1x32x1xf32>
    %15 = vector.shape_cast %14 : vector<1x1x32x1xf32> to vector<32x1xf32>
    %16 = vector.broadcast %15 : vector<32x1xf32> to vector<32x128xf32>
    %17 = arith.addf %13, %16 : vector<32x128xf32>
    %cst_18 = arith.constant 0.000000e+00 : f32
    %18 = vector.broadcast %cst_18 : f32 to vector<32x128xf32>
    %19 = arith.maximumf %17, %18 : vector<32x128xf32>
    %c0_19 = arith.constant 0 : index
    %c1_20 = arith.constant 1 : index
    %c0_21 = arith.constant 0 : index
    %c0_22 = arith.constant 0 : index
    %20 = vector.load %arg3[%c0_19, %c1_20, %c0_21, %c0_22] : memref<3x2x32x32xf32, #tpu.memory_space<vmem>>, vector<1x1x32x32xf32>
    %21 = vector.shape_cast %20 : vector<1x1x32x32xf32> to vector<32x32xf32>
    %cst_23 = arith.constant dense<0.000000e+00> : vector<32x128xf32>
    %22 = tpu.matmul %21, %19, %cst_23 {dimension_numbers = #tpu.dot_dimension_numbers<[1], [0], [0], [1], [0, 0, 1, 1], [], []>} : vector<32x32xf32>, vector<32x128xf32>, vector<32x128xf32> -> vector<32x128xf32>
    %c0_24 = arith.constant 0 : index
    %c2 = arith.constant 2 : index
    %c0_25 = arith.constant 0 : index
    %c0_26 = arith.constant 0 : index
    %23 = vector.load %arg5[%c0_24, %c2, %c0_25, %c0_26] : memref<3x3x32x1xf32, #tpu.memory_space<vmem>>, vector<1x1x32x1xf32>
    %24 = vector.shape_cast %23 : vector<1x1x32x1xf32> to vector<32x1xf32>
    %25 = vector.broadcast %24 : vector<32x1xf32> to vector<32x128xf32>
    %26 = arith.addf %22, %25 : vector<32x128xf32>
    %cst_27 = arith.constant 0.000000e+00 : f32
    %27 = vector.broadcast %cst_27 : f32 to vector<32x128xf32>
    %28 = arith.maximumf %26, %27 : vector<32x128xf32>
    %c0_28 = arith.constant 0 : index
    %c0_29 = arith.constant 0 : index
    %c0_30 = arith.constant 0 : index
    %29 = vector.load %arg4[%c0_28, %c0_29, %c0_30] : memref<3x16x32xf32, #tpu.memory_space<vmem>>, vector<1x16x32xf32>
    %30 = vector.shape_cast %29 : vector<1x16x32xf32> to vector<16x32xf32>
    %cst_31 = arith.constant dense<0.000000e+00> : vector<16x128xf32>
    %31 = tpu.matmul %30, %28, %cst_31 {dimension_numbers = #tpu.dot_dimension_numbers<[1], [0], [0], [1], [0, 0, 1, 1], [], []>} : vector<16x32xf32>, vector<32x128xf32>, vector<16x128xf32> -> vector<16x128xf32>
    %c0_32 = arith.constant 0 : index
    %c0_33 = arith.constant 0 : index
    %c0_34 = arith.constant 0 : index
    %32 = vector.load %arg6[%c0_32, %c0_33, %c0_34] : memref<3x16x1xf32, #tpu.memory_space<vmem>>, vector<1x16x1xf32>
    %33 = vector.shape_cast %32 : vector<1x16x1xf32> to vector<16x1xf32>
    %34 = vector.broadcast %33 : vector<16x1xf32> to vector<16x128xf32>
    %35 = arith.addf %31, %34 : vector<16x128xf32>
    %36 = vector.extract_strided_slice %35 {offsets = [0, 0], sizes = [8, 128], strides = [1, 1]} : vector<16x128xf32> to vector<8x128xf32>
    %37 = vector.extract_strided_slice %35 {offsets = [8, 0], sizes = [8, 128], strides = [1, 1]} : vector<16x128xf32> to vector<8x128xf32>
    %38 = math.absf %36 : vector<8x128xf32>
    %cst_35 = arith.constant 0.000000e+00 : f32
    %39 = vector.broadcast %cst_35 : f32 to vector<8x128xf32>
    %40 = arith.subf %39, %38 : vector<8x128xf32>
    %41 = math.exp %40 : vector<8x128xf32>
    %cst_36 = arith.constant 1.000000e+00 : f32
    %42 = vector.broadcast %cst_36 : f32 to vector<8x128xf32>
    %43 = arith.addf %42, %41 : vector<8x128xf32>
    %cst_37 = arith.constant 1.000000e+00 : f32
    %44 = vector.broadcast %cst_37 : f32 to vector<8x128xf32>
    %45 = arith.divf %44, %43 : vector<8x128xf32>
    %cst_38 = arith.constant 0.000000e+00 : f32
    %46 = vector.broadcast %cst_38 : f32 to vector<8x128xf32>
    %47 = arith.cmpf oge, %36, %46 : vector<8x128xf32>
    %48 = arith.mulf %41, %45 : vector<8x128xf32>
    %49 = arith.select %47, %45, %48 : vector<8x128xi1>, vector<8x128xf32>
    %50 = arith.subf %0, %37 : vector<8x128xf32>
    %51 = arith.mulf %49, %50 : vector<8x128xf32>
    %52 = arith.addf %37, %51 : vector<8x128xf32>
    %cst_39 = arith.constant 0.000000e+00 : f32
    %53 = vector.broadcast %cst_39 : f32 to vector<8x128xf32>
    %54 = arith.subf %53, %36 : vector<8x128xf32>
    %cst_40 = arith.constant 0.000000e+00 : f32
    %55 = vector.broadcast %cst_40 : f32 to vector<8x128xf32>
    %56 = arith.maximumf %54, %55 : vector<8x128xf32>
    %57 = math.log1p %41 : vector<8x128xf32>
    %58 = arith.addf %56, %57 : vector<8x128xf32>
    %59 = arith.addf %1, %58 : vector<8x128xf32>
    %c1_41 = arith.constant 1 : index
    %c0_42 = arith.constant 0 : index
    %c0_43 = arith.constant 0 : index
    %60 = vector.load %arg2[%c1_41, %c0_42, %c0_43] : memref<3x32x8xf32, #tpu.memory_space<vmem>>, vector<1x32x8xf32>
    %61 = vector.shape_cast %60 : vector<1x32x8xf32> to vector<32x8xf32>
    %cst_44 = arith.constant dense<0.000000e+00> : vector<32x128xf32>
    %62 = tpu.matmul %61, %52, %cst_44 {dimension_numbers = #tpu.dot_dimension_numbers<[1], [0], [0], [1], [0, 0, 1, 1], [], []>} : vector<32x8xf32>, vector<8x128xf32>, vector<32x128xf32> -> vector<32x128xf32>
    %c1_45 = arith.constant 1 : index
    %c0_46 = arith.constant 0 : index
    %c0_47 = arith.constant 0 : index
    %c0_48 = arith.constant 0 : index
    %63 = vector.load %arg5[%c1_45, %c0_46, %c0_47, %c0_48] : memref<3x3x32x1xf32, #tpu.memory_space<vmem>>, vector<1x1x32x1xf32>
    %64 = vector.shape_cast %63 : vector<1x1x32x1xf32> to vector<32x1xf32>
    %65 = vector.broadcast %64 : vector<32x1xf32> to vector<32x128xf32>
    %66 = arith.addf %62, %65 : vector<32x128xf32>
    %cst_49 = arith.constant 0.000000e+00 : f32
    %67 = vector.broadcast %cst_49 : f32 to vector<32x128xf32>
    %68 = arith.maximumf %66, %67 : vector<32x128xf32>
    %c1_50 = arith.constant 1 : index
    %c0_51 = arith.constant 0 : index
    %c0_52 = arith.constant 0 : index
    %c0_53 = arith.constant 0 : index
    %69 = vector.load %arg3[%c1_50, %c0_51, %c0_52, %c0_53] : memref<3x2x32x32xf32, #tpu.memory_space<vmem>>, vector<1x1x32x32xf32>
    %70 = vector.shape_cast %69 : vector<1x1x32x32xf32> to vector<32x32xf32>
    %cst_54 = arith.constant dense<0.000000e+00> : vector<32x128xf32>
    %71 = tpu.matmul %70, %68, %cst_54 {dimension_numbers = #tpu.dot_dimension_numbers<[1], [0], [0], [1], [0, 0, 1, 1], [], []>} : vector<32x32xf32>, vector<32x128xf32>, vector<32x128xf32> -> vector<32x128xf32>
    %c1_55 = arith.constant 1 : index
    %c1_56 = arith.constant 1 : index
    %c0_57 = arith.constant 0 : index
    %c0_58 = arith.constant 0 : index
    %72 = vector.load %arg5[%c1_55, %c1_56, %c0_57, %c0_58] : memref<3x3x32x1xf32, #tpu.memory_space<vmem>>, vector<1x1x32x1xf32>
    %73 = vector.shape_cast %72 : vector<1x1x32x1xf32> to vector<32x1xf32>
    %74 = vector.broadcast %73 : vector<32x1xf32> to vector<32x128xf32>
    %75 = arith.addf %71, %74 : vector<32x128xf32>
    %cst_59 = arith.constant 0.000000e+00 : f32
    %76 = vector.broadcast %cst_59 : f32 to vector<32x128xf32>
    %77 = arith.maximumf %75, %76 : vector<32x128xf32>
    %c1_60 = arith.constant 1 : index
    %c1_61 = arith.constant 1 : index
    %c0_62 = arith.constant 0 : index
    %c0_63 = arith.constant 0 : index
    %78 = vector.load %arg3[%c1_60, %c1_61, %c0_62, %c0_63] : memref<3x2x32x32xf32, #tpu.memory_space<vmem>>, vector<1x1x32x32xf32>
    %79 = vector.shape_cast %78 : vector<1x1x32x32xf32> to vector<32x32xf32>
    %cst_64 = arith.constant dense<0.000000e+00> : vector<32x128xf32>
    %80 = tpu.matmul %79, %77, %cst_64 {dimension_numbers = #tpu.dot_dimension_numbers<[1], [0], [0], [1], [0, 0, 1, 1], [], []>} : vector<32x32xf32>, vector<32x128xf32>, vector<32x128xf32> -> vector<32x128xf32>
    %c1_65 = arith.constant 1 : index
    %c2_66 = arith.constant 2 : index
    %c0_67 = arith.constant 0 : index
    %c0_68 = arith.constant 0 : index
    %81 = vector.load %arg5[%c1_65, %c2_66, %c0_67, %c0_68] : memref<3x3x32x1xf32, #tpu.memory_space<vmem>>, vector<1x1x32x1xf32>
    %82 = vector.shape_cast %81 : vector<1x1x32x1xf32> to vector<32x1xf32>
    %83 = vector.broadcast %82 : vector<32x1xf32> to vector<32x128xf32>
    %84 = arith.addf %80, %83 : vector<32x128xf32>
    %cst_69 = arith.constant 0.000000e+00 : f32
    %85 = vector.broadcast %cst_69 : f32 to vector<32x128xf32>
    %86 = arith.maximumf %84, %85 : vector<32x128xf32>
    %c1_70 = arith.constant 1 : index
    %c0_71 = arith.constant 0 : index
    %c0_72 = arith.constant 0 : index
    %87 = vector.load %arg4[%c1_70, %c0_71, %c0_72] : memref<3x16x32xf32, #tpu.memory_space<vmem>>, vector<1x16x32xf32>
    %88 = vector.shape_cast %87 : vector<1x16x32xf32> to vector<16x32xf32>
    %cst_73 = arith.constant dense<0.000000e+00> : vector<16x128xf32>
    %89 = tpu.matmul %88, %86, %cst_73 {dimension_numbers = #tpu.dot_dimension_numbers<[1], [0], [0], [1], [0, 0, 1, 1], [], []>} : vector<16x32xf32>, vector<32x128xf32>, vector<16x128xf32> -> vector<16x128xf32>
    %c1_74 = arith.constant 1 : index
    %c0_75 = arith.constant 0 : index
    %c0_76 = arith.constant 0 : index
    %90 = vector.load %arg6[%c1_74, %c0_75, %c0_76] : memref<3x16x1xf32, #tpu.memory_space<vmem>>, vector<1x16x1xf32>
    %91 = vector.shape_cast %90 : vector<1x16x1xf32> to vector<16x1xf32>
    %92 = vector.broadcast %91 : vector<16x1xf32> to vector<16x128xf32>
    %93 = arith.addf %89, %92 : vector<16x128xf32>
    %94 = vector.extract_strided_slice %93 {offsets = [0, 0], sizes = [8, 128], strides = [1, 1]} : vector<16x128xf32> to vector<8x128xf32>
    %95 = vector.extract_strided_slice %93 {offsets = [8, 0], sizes = [8, 128], strides = [1, 1]} : vector<16x128xf32> to vector<8x128xf32>
    %96 = math.absf %94 : vector<8x128xf32>
    %cst_77 = arith.constant 0.000000e+00 : f32
    %97 = vector.broadcast %cst_77 : f32 to vector<8x128xf32>
    %98 = arith.subf %97, %96 : vector<8x128xf32>
    %99 = math.exp %98 : vector<8x128xf32>
    %cst_78 = arith.constant 1.000000e+00 : f32
    %100 = vector.broadcast %cst_78 : f32 to vector<8x128xf32>
    %101 = arith.addf %100, %99 : vector<8x128xf32>
    %cst_79 = arith.constant 1.000000e+00 : f32
    %102 = vector.broadcast %cst_79 : f32 to vector<8x128xf32>
    %103 = arith.divf %102, %101 : vector<8x128xf32>
    %cst_80 = arith.constant 0.000000e+00 : f32
    %104 = vector.broadcast %cst_80 : f32 to vector<8x128xf32>
    %105 = arith.cmpf oge, %94, %104 : vector<8x128xf32>
    %106 = arith.mulf %99, %103 : vector<8x128xf32>
    %107 = arith.select %105, %103, %106 : vector<8x128xi1>, vector<8x128xf32>
    %108 = arith.subf %52, %95 : vector<8x128xf32>
    %109 = arith.mulf %107, %108 : vector<8x128xf32>
    %110 = arith.addf %95, %109 : vector<8x128xf32>
    %cst_81 = arith.constant 0.000000e+00 : f32
    %111 = vector.broadcast %cst_81 : f32 to vector<8x128xf32>
    %112 = arith.subf %111, %94 : vector<8x128xf32>
    %cst_82 = arith.constant 0.000000e+00 : f32
    %113 = vector.broadcast %cst_82 : f32 to vector<8x128xf32>
    %114 = arith.maximumf %112, %113 : vector<8x128xf32>
    %115 = math.log1p %99 : vector<8x128xf32>
    %116 = arith.addf %114, %115 : vector<8x128xf32>
    %117 = arith.addf %59, %116 : vector<8x128xf32>
    %c2_83 = arith.constant 2 : index
    %c0_84 = arith.constant 0 : index
    %c0_85 = arith.constant 0 : index
    %118 = vector.load %arg2[%c2_83, %c0_84, %c0_85] : memref<3x32x8xf32, #tpu.memory_space<vmem>>, vector<1x32x8xf32>
    %119 = vector.shape_cast %118 : vector<1x32x8xf32> to vector<32x8xf32>
    %cst_86 = arith.constant dense<0.000000e+00> : vector<32x128xf32>
    %120 = tpu.matmul %119, %110, %cst_86 {dimension_numbers = #tpu.dot_dimension_numbers<[1], [0], [0], [1], [0, 0, 1, 1], [], []>} : vector<32x8xf32>, vector<8x128xf32>, vector<32x128xf32> -> vector<32x128xf32>
    %c2_87 = arith.constant 2 : index
    %c0_88 = arith.constant 0 : index
    %c0_89 = arith.constant 0 : index
    %c0_90 = arith.constant 0 : index
    %121 = vector.load %arg5[%c2_87, %c0_88, %c0_89, %c0_90] : memref<3x3x32x1xf32, #tpu.memory_space<vmem>>, vector<1x1x32x1xf32>
    %122 = vector.shape_cast %121 : vector<1x1x32x1xf32> to vector<32x1xf32>
    %123 = vector.broadcast %122 : vector<32x1xf32> to vector<32x128xf32>
    %124 = arith.addf %120, %123 : vector<32x128xf32>
    %cst_91 = arith.constant 0.000000e+00 : f32
    %125 = vector.broadcast %cst_91 : f32 to vector<32x128xf32>
    %126 = arith.maximumf %124, %125 : vector<32x128xf32>
    %c2_92 = arith.constant 2 : index
    %c0_93 = arith.constant 0 : index
    %c0_94 = arith.constant 0 : index
    %c0_95 = arith.constant 0 : index
    %127 = vector.load %arg3[%c2_92, %c0_93, %c0_94, %c0_95] : memref<3x2x32x32xf32, #tpu.memory_space<vmem>>, vector<1x1x32x32xf32>
    %128 = vector.shape_cast %127 : vector<1x1x32x32xf32> to vector<32x32xf32>
    %cst_96 = arith.constant dense<0.000000e+00> : vector<32x128xf32>
    %129 = tpu.matmul %128, %126, %cst_96 {dimension_numbers = #tpu.dot_dimension_numbers<[1], [0], [0], [1], [0, 0, 1, 1], [], []>} : vector<32x32xf32>, vector<32x128xf32>, vector<32x128xf32> -> vector<32x128xf32>
    %c2_97 = arith.constant 2 : index
    %c1_98 = arith.constant 1 : index
    %c0_99 = arith.constant 0 : index
    %c0_100 = arith.constant 0 : index
    %130 = vector.load %arg5[%c2_97, %c1_98, %c0_99, %c0_100] : memref<3x3x32x1xf32, #tpu.memory_space<vmem>>, vector<1x1x32x1xf32>
    %131 = vector.shape_cast %130 : vector<1x1x32x1xf32> to vector<32x1xf32>
    %132 = vector.broadcast %131 : vector<32x1xf32> to vector<32x128xf32>
    %133 = arith.addf %129, %132 : vector<32x128xf32>
    %cst_101 = arith.constant 0.000000e+00 : f32
    %134 = vector.broadcast %cst_101 : f32 to vector<32x128xf32>
    %135 = arith.maximumf %133, %134 : vector<32x128xf32>
    %c2_102 = arith.constant 2 : index
    %c1_103 = arith.constant 1 : index
    %c0_104 = arith.constant 0 : index
    %c0_105 = arith.constant 0 : index
    %136 = vector.load %arg3[%c2_102, %c1_103, %c0_104, %c0_105] : memref<3x2x32x32xf32, #tpu.memory_space<vmem>>, vector<1x1x32x32xf32>
    %137 = vector.shape_cast %136 : vector<1x1x32x32xf32> to vector<32x32xf32>
    %cst_106 = arith.constant dense<0.000000e+00> : vector<32x128xf32>
    %138 = tpu.matmul %137, %135, %cst_106 {dimension_numbers = #tpu.dot_dimension_numbers<[1], [0], [0], [1], [0, 0, 1, 1], [], []>} : vector<32x32xf32>, vector<32x128xf32>, vector<32x128xf32> -> vector<32x128xf32>
    %c2_107 = arith.constant 2 : index
    %c2_108 = arith.constant 2 : index
    %c0_109 = arith.constant 0 : index
    %c0_110 = arith.constant 0 : index
    %139 = vector.load %arg5[%c2_107, %c2_108, %c0_109, %c0_110] : memref<3x3x32x1xf32, #tpu.memory_space<vmem>>, vector<1x1x32x1xf32>
    %140 = vector.shape_cast %139 : vector<1x1x32x1xf32> to vector<32x1xf32>
    %141 = vector.broadcast %140 : vector<32x1xf32> to vector<32x128xf32>
    %142 = arith.addf %138, %141 : vector<32x128xf32>
    %cst_111 = arith.constant 0.000000e+00 : f32
    %143 = vector.broadcast %cst_111 : f32 to vector<32x128xf32>
    %144 = arith.maximumf %142, %143 : vector<32x128xf32>
    %c2_112 = arith.constant 2 : index
    %c0_113 = arith.constant 0 : index
    %c0_114 = arith.constant 0 : index
    %145 = vector.load %arg4[%c2_112, %c0_113, %c0_114] : memref<3x16x32xf32, #tpu.memory_space<vmem>>, vector<1x16x32xf32>
    %146 = vector.shape_cast %145 : vector<1x16x32xf32> to vector<16x32xf32>
    %cst_115 = arith.constant dense<0.000000e+00> : vector<16x128xf32>
    %147 = tpu.matmul %146, %144, %cst_115 {dimension_numbers = #tpu.dot_dimension_numbers<[1], [0], [0], [1], [0, 0, 1, 1], [], []>} : vector<16x32xf32>, vector<32x128xf32>, vector<16x128xf32> -> vector<16x128xf32>
    %c2_116 = arith.constant 2 : index
    %c0_117 = arith.constant 0 : index
    %c0_118 = arith.constant 0 : index
    %148 = vector.load %arg6[%c2_116, %c0_117, %c0_118] : memref<3x16x1xf32, #tpu.memory_space<vmem>>, vector<1x16x1xf32>
    %149 = vector.shape_cast %148 : vector<1x16x1xf32> to vector<16x1xf32>
    %150 = vector.broadcast %149 : vector<16x1xf32> to vector<16x128xf32>
    %151 = arith.addf %147, %150 : vector<16x128xf32>
    %152 = vector.extract_strided_slice %151 {offsets = [0, 0], sizes = [8, 128], strides = [1, 1]} : vector<16x128xf32> to vector<8x128xf32>
    %153 = vector.extract_strided_slice %151 {offsets = [8, 0], sizes = [8, 128], strides = [1, 1]} : vector<16x128xf32> to vector<8x128xf32>
    %154 = math.absf %152 : vector<8x128xf32>
    %cst_119 = arith.constant 0.000000e+00 : f32
    %155 = vector.broadcast %cst_119 : f32 to vector<8x128xf32>
    %156 = arith.subf %155, %154 : vector<8x128xf32>
    %157 = math.exp %156 : vector<8x128xf32>
    %cst_120 = arith.constant 1.000000e+00 : f32
    %158 = vector.broadcast %cst_120 : f32 to vector<8x128xf32>
    %159 = arith.addf %158, %157 : vector<8x128xf32>
    %cst_121 = arith.constant 1.000000e+00 : f32
    %160 = vector.broadcast %cst_121 : f32 to vector<8x128xf32>
    %161 = arith.divf %160, %159 : vector<8x128xf32>
    %cst_122 = arith.constant 0.000000e+00 : f32
    %162 = vector.broadcast %cst_122 : f32 to vector<8x128xf32>
    %163 = arith.cmpf oge, %152, %162 : vector<8x128xf32>
    %164 = arith.mulf %157, %161 : vector<8x128xf32>
    %165 = arith.select %163, %161, %164 : vector<8x128xi1>, vector<8x128xf32>
    %166 = arith.subf %110, %153 : vector<8x128xf32>
    %167 = arith.mulf %165, %166 : vector<8x128xf32>
    %168 = arith.addf %153, %167 : vector<8x128xf32>
    %cst_123 = arith.constant 0.000000e+00 : f32
    %169 = vector.broadcast %cst_123 : f32 to vector<8x128xf32>
    %170 = arith.subf %169, %152 : vector<8x128xf32>
    %cst_124 = arith.constant 0.000000e+00 : f32
    %171 = vector.broadcast %cst_124 : f32 to vector<8x128xf32>
    %172 = arith.maximumf %170, %171 : vector<8x128xf32>
    %173 = math.log1p %157 : vector<8x128xf32>
    %174 = arith.addf %172, %173 : vector<8x128xf32>
    %175 = arith.addf %117, %174 : vector<8x128xf32>
    %c0_125 = arith.constant 0 : index
    %c0_126 = arith.constant 0 : index
    %176 = vector.load %arg7[%c0_125, %c0_126] : memref<8x128xf32, #tpu.memory_space<vmem>>, vector<8x128xf32>
    tpu.vector_store %arg7[%c0_125, %c0_126], %168 {strides = array<i32>} : memref<8x128xf32, #tpu.memory_space<vmem>>, vector<8x128xf32>,
    %cst_127 = arith.constant dense<0.000000e+00> : vector<128xf32>
    %177 = vector.multi_reduction <add>, %175, %cst_127 [0] : vector<8x128xf32> to vector<128xf32>
    %178 = vector.shape_cast %177 : vector<128xf32> to vector<1x128xf32>
    %c0_128 = arith.constant 0 : index
    %c0_129 = arith.constant 0 : index
    %179 = vector.load %arg8[%c0_128, %c0_129] : memref<1x128xf32, #tpu.memory_space<vmem>>, vector<1x128xf32>
    tpu.vector_store %arg8[%c0_128, %c0_129], %178 {strides = array<i32>} : memref<1x128xf32, #tpu.memory_space<vmem>>, vector<1x128xf32>,
    return
  }
  func.func @transform_0(%arg0: i32) -> (i32, i32) {
    %c0_i32 = arith.constant 0 : i32
    %c0_i32_0 = arith.constant 0 : i32
    return %c0_i32, %arg0 : i32, i32
  }
  func.func @transform_1(%arg0: i32) -> (i32, i32, i32) {
    %c0_i32 = arith.constant 0 : i32
    %c0_i32_0 = arith.constant 0 : i32
    %c0_i32_1 = arith.constant 0 : i32
    %c0_i32_2 = arith.constant 0 : i32
    return %c0_i32, %c0_i32_0, %c0_i32_1 : i32, i32, i32
  }
  func.func @transform_2(%arg0: i32) -> (i32, i32, i32, i32) {
    %c0_i32 = arith.constant 0 : i32
    %c0_i32_0 = arith.constant 0 : i32
    %c0_i32_1 = arith.constant 0 : i32
    %c0_i32_2 = arith.constant 0 : i32
    %c0_i32_3 = arith.constant 0 : i32
    return %c0_i32, %c0_i32_0, %c0_i32_1, %c0_i32_2 : i32, i32, i32, i32
  }
  func.func @transform_3(%arg0: i32) -> (i32, i32, i32) {
    %c0_i32 = arith.constant 0 : i32
    %c0_i32_0 = arith.constant 0 : i32
    %c0_i32_1 = arith.constant 0 : i32
    %c0_i32_2 = arith.constant 0 : i32
    return %c0_i32, %c0_i32_0, %c0_i32_1 : i32, i32, i32
  }
  func.func @transform_4(%arg0: i32) -> (i32, i32, i32, i32) {
    %c0_i32 = arith.constant 0 : i32
    %c0_i32_0 = arith.constant 0 : i32
    %c0_i32_1 = arith.constant 0 : i32
    %c0_i32_2 = arith.constant 0 : i32
    %c0_i32_3 = arith.constant 0 : i32
    return %c0_i32, %c0_i32_0, %c0_i32_1, %c0_i32_2 : i32, i32, i32, i32
  }
  func.func @transform_5(%arg0: i32) -> (i32, i32, i32) {
    %c0_i32 = arith.constant 0 : i32
    %c0_i32_0 = arith.constant 0 : i32
    %c0_i32_1 = arith.constant 0 : i32
    %c0_i32_2 = arith.constant 0 : i32
    return %c0_i32, %c0_i32_0, %c0_i32_1 : i32, i32, i32
  }
  func.func @transform_6(%arg0: i32) -> (i32, i32) {
    %c0_i32 = arith.constant 0 : i32
    %c0_i32_0 = arith.constant 0 : i32
    return %c0_i32, %arg0 : i32, i32
  }
  func.func @transform_7(%arg0: i32) -> (i32, i32) {
    %c0_i32 = arith.constant 0 : i32
    %c0_i32_0 = arith.constant 0 : i32
    return %c0_i32, %arg0 : i32, i32
  }
}

</mosaic_0001>

<bundles_post_ra>
// kernel: tpu_custom_call.1
= control target key start
LH: loop header
LB: loop body
LE: loop exit
PB: predicated region body
PF: predicated region fallthrough
CT: control target
= control target key end

     0   :  { %13 = vsyncpa [#allocation3], 0  ;;  %vm56_vm0 = vcmask 64512   ;;  %v2084_v5 = vmov 0   ;;  %s2469_s0 = inlined_call_operand.vmem [shape: f32[8,128], index: 0, kind: input, shape index: {}]   ;;  %s2470_s1 = inlined_call_operand.vmem [shape: f32[3,32,8], index: 1, kind: input, shape index: {}]   ;;  %s2471_s2 = inlined_call_operand.vmem [shape: f32[3,2,32,32], index: 2, kind: input, shape index: {}]   ;;  %s2472_s3 = inlined_call_operand.vmem [shape: f32[3,16,32], index: 3, kind: input, shape index: {}]   ;;  %s2473_s4 = inlined_call_operand.vmem [shape: f32[3,3,32,1], index: 4, kind: input, shape index: {}]   ;;  %s2474_s5 = inlined_call_operand.vmem [shape: f32[3,16,1], index: 5, kind: input, shape index: {}]   ;;  %s2475_s6 = inlined_call_operand.hbm [shape: f32[8,128], index: 6, kind: output, shape index: {0}]   ;;  %s2476_s7 = inlined_call_operand.hbm [shape: f32[1,128], index: 7, kind: output, shape index: {1}]  }
   0x1   :  { %v2130_v0 = vld [vmem:[%s2469_s0] sm:$0xff]  ;;  %v29_v2 = vld [vmem:[%s2470_s1 + $0x8] sm:$0xff]  ;;  %v30_v4 = vld [vmem:[%s2470_s1 + $0x10] sm:$0xff]  ;;  %2016 = vset.pattern.permute.xlu0 %v2084_v5  ;;  %2017 = vset.pattern.permute.xlu1 %v2084_v5 }
   0x2   :  { %v28_v1 = vld [vmem:[%s2470_s1] sm:$0xff]  ;;  %1800 = vmatprep.subr.mxu0 %v2130_v0  ;;  %v34_v6 = vld [vmem:[%s2473_s4 + $0x10] sm:$0xff]  ;;  %v31_v7 = vld [vmem:[%s2470_s1 + $0x18] sm:$0xff] }
   0x3   :  { %1802 = vmatprep.mubr.msk.f32.mxu0 %vm56_vm0, %v28_v1  ;;  %v32_v3 = vld [vmem:[%s2473_s4] sm:$0xff]  ;;  %1801 = vmatpush3.msra.mxu0 %v2130_v0  ;;  %v33_v8 = vld [vmem:[%s2473_s4 + $0x8] sm:$0xff]  ;;  %v35_v9 = vld [vmem:[%s2473_s4 + $0x18] sm:$0xff] }
   0x4   :  { %1803 = vmatmul.mubr.msk.f32.vlgmr.msra.gmra.mrb[0].mxu0 %vm56_vm0, %v29_v2  ;;  %38 = vperm.xlu0 %2016, %v32_v3   ;;  %v1613_v10 = vld [vmem:[%s2473_s4 + $0x20] sm:$0xff]  ;;  %v1614_v11 = vld [vmem:[%s2473_s4 + $0x28] sm:$0xff]  ;;  %v1615_v12 = vld [vmem:[%s2473_s4 + $0x30] sm:$0xff] }
   0x5   :  { %1805 = vmatprep.mubr.msk.f32.mxu0 %vm56_vm0, %v30_v4  ;;  %48 = vperm.xlu1 %2017, %v34_v6   ;;  %v1616_v13 = vld [vmem:[%s2473_s4 + $0x38] sm:$0xff] }
   0x8   :  { %1806 = vmatmul.mubr.msk.f32.gmra.mrb[2].mxu0 %vm56_vm0, %v31_v7  ;;  %43 = vperm.xlu0 %2016, %v33_v8  }
   0x9   :  { %53 = vperm.xlu1 %2017, %v35_v9  }
   0xc   :  { %169 = vperm.xlu0 %2016, %v1613_v10  }
   0xd   :  { %174 = vperm.xlu1 %2017, %v1614_v11  }
  0x10   :  { %179 = vperm.xlu0 %2016, %v1615_v12  }
  0x11   :  { %14 = vsyncpa [#allocation5], 0  ;;  %v1625_v14 = vld [vmem:[%s2473_s4 + $0x40] sm:$0xff]  ;;  %184 = vperm.xlu1 %2017, %v1616_v13   ;;  %v1626_v15 = vld [vmem:[%s2473_s4 + $0x48] sm:$0xff]  ;;  %vm187_vm1 = vcmask 261120  }
  0x12   :  { %v1627_v16 = vld [vmem:[%s2473_s4 + $0x50] sm:$0xff]  ;;  %v1628_v17 = vld [vmem:[%s2473_s4 + $0x58] sm:$0xff]  ;;  %v422_v18 = vld [vmem:[%s2474_s5] sm:$0xff] }
  0x13   :  { %v423_v19 = vld [vmem:[%s2474_s5 + $0x8] sm:$0xff]  ;;  %v1639_v20 = vld [vmem:[%s2473_s4 + $0x60] sm:$0xff]  ;;  %v1641_v22 = vld [vmem:[%s2473_s4 + $0x70] sm:$0xff] }
  0x14   :  { %301 = vperm.xlu0 %2016, %v1625_v14   ;;  %v1640_v21 = vld [vmem:[%s2473_s4 + $0x68] sm:$0xff]  ;;  %v1642_v23 = vld [vmem:[%s2473_s4 + $0x78] sm:$0xff]  ;;  %v1651_v24 = vld [vmem:[%s2473_s4 + $0x80] sm:$0xff] }
  0x15   :  { %306 = vperm.xlu1 %2017, %v1626_v15   ;;  %v1652_v25 = vld [vmem:[%s2473_s4 + $0x88] sm:$0xff]  ;;  %v1653_v26 = vld [vmem:[%s2473_s4 + $0x90] sm:$0xff]  ;;  %v1654_v27 = vld [vmem:[%s2473_s4 + $0x98] sm:$0xff] }
  0x16   :  { %v1663_v28 = vld [vmem:[%s2473_s4 + $0xa0] sm:$0xff]  ;;  %v1664_v29 = vld [vmem:[%s2473_s4 + $0xa8] sm:$0xff]  ;;  %v1665_v30 = vld [vmem:[%s2473_s4 + $0xb0] sm:$0xff] }
  0x17   :  { %v1666_v31 = vld [vmem:[%s2473_s4 + $0xb8] sm:$0xff]  ;;  %v1673_v32 = vld [vmem:[%s2474_s5 + $0x10] sm:$0xff]  ;;  %v1681_v34 = vld [vmem:[%s2473_s4 + $0xc0] sm:$0xff] }
  0x18   :  { %311 = vperm.xlu0 %2016, %v1627_v16   ;;  %v1674_v33 = vld [vmem:[%s2474_s5 + $0x18] sm:$0xff]  ;;  %v1682_v35 = vld [vmem:[%s2473_s4 + $0xc8] sm:$0xff]  ;;  %v1683_v36 = vld [vmem:[%s2473_s4 + $0xd0] sm:$0xff] }
  0x19   :  { %316 = vperm.xlu1 %2017, %v1628_v17   ;;  %v1684_v37 = vld [vmem:[%s2473_s4 + $0xd8] sm:$0xff]  ;;  %v1693_v38 = vld [vmem:[%s2473_s4 + $0xe0] sm:$0xff]  ;;  %v1694_v39 = vld [vmem:[%s2473_s4 + $0xe8] sm:$0xff] }
  0x1a   :  { %v1695_v40 = vld [vmem:[%s2473_s4 + $0xf0] sm:$0xff]  ;;  %v1696_v41 = vld [vmem:[%s2473_s4 + $0xf8] sm:$0xff]  ;;  %v1705_v42 = vld [vmem:[%s2473_s4 + $0x100] sm:$0xff] }
  0x1b   :  { %v1706_v43 = vld [vmem:[%s2473_s4 + $0x108] sm:$0xff]  ;;  %v1707_v44 = vld [vmem:[%s2473_s4 + $0x110] sm:$0xff]  ;;  %v1708_v45 = vld [vmem:[%s2473_s4 + $0x118] sm:$0xff] }
  0x1c   :  { %426 = vperm.xlu0 %2016, %v422_v18   ;;  %v1715_v46 = vld [vmem:[%s2474_s5 + $0x20] sm:$0xff]  ;;  %v1716_v47 = vld [vmem:[%s2474_s5 + $0x28] sm:$0xff]  ;;  %v160_v5 = vld [vmem:[%s2471_s2 + $0x10] sm:$0xff] }
  0x1d   :  { %431 = vperm.xlu1 %2017, %v423_v19   ;;  %v158_v48 = vld [vmem:[%s2471_s2] sm:$0xff]  ;;  %v159_v4 = vld [vmem:[%s2471_s2 + $0x8] sm:$0xff]  ;;  %v161_v6 = vld [vmem:[%s2471_s2 + $0x18] sm:$0xff] }
  0x1e   :  { %1816 = vmatprep.mubr.msk.f32.mxu1 %vm187_vm1, %v158_v48  ;;  %v1621_v7 = vld [vmem:[%s2471_s2 + $0x20] sm:$0xff]  ;;  %v421_v48 = vld [vmem:[%s2472_s3 + $0x8] sm:$0xff] }
  0x1f   :  { %1830 = vmatprep.mubr.msk.f32.mxu0 %vm187_vm1, %v1621_v7 }
  0x20   :  { %553 = vperm.xlu0 %2016, %v1639_v20  }
  0x21   :  { %558 = vperm.xlu1 %2017, %v1640_v21  }
  0x24   :  { %563 = vperm.xlu0 %2016, %v1641_v22  }
  0x25   :  { %568 = vperm.xlu1 %2017, %v1642_v23  }
  0x28   :  { %684 = vperm.xlu0 %2016, %v1651_v24  }
  0x29   :  { %689 = vperm.xlu1 %2017, %v1652_v25  }
  0x2c   :  { %694 = vperm.xlu0 %2016, %v1653_v26   ;;  %v1622_v26 = vld [vmem:[%s2471_s2 + $0x28] sm:$0xff] }
  0x2d   :  { %699 = vperm.xlu1 %2017, %v1654_v27   ;;  %v1623_v27 = vld [vmem:[%s2471_s2 + $0x30] sm:$0xff] }
  0x30   :  { %815 = vperm.xlu0 %2016, %v1663_v28   ;;  %v1624_v28 = vld [vmem:[%s2471_s2 + $0x38] sm:$0xff] }
  0x31   :  { %820 = vperm.xlu1 %2017, %v1664_v29   ;;  %v420_v29 = vld [vmem:[%s2472_s3] sm:$0xff] }
  0x34   :  { %825 = vperm.xlu0 %2016, %v1665_v30  }
  0x35   :  { %830 = vperm.xlu1 %2017, %v1666_v31  }
  0x38   :  { %942 = vperm.xlu0 %2016, %v1673_v32  }
  0x39   :  { %947 = vperm.xlu1 %2017, %v1674_v33  }
  0x3c   :  { %1069 = vperm.xlu0 %2016, %v1681_v34  }
  0x3d   :  { %1074 = vperm.xlu1 %2017, %v1682_v35  }
  0x40   :  { %1079 = vperm.xlu0 %2016, %v1683_v36  }
  0x41   :  { %1084 = vperm.xlu1 %2017, %v1684_v37  }
  0x44   :  { %1200 = vperm.xlu0 %2016, %v1693_v38  }
  0x45   :  { %1205 = vperm.xlu1 %2017, %v1694_v39  }
  0x48   :  { %1210 = vperm.xlu0 %2016, %v1695_v40  }
  0x49   :  { %1215 = vperm.xlu1 %2017, %v1696_v41  }
  0x4c   :  { %1331 = vperm.xlu0 %2016, %v1705_v42  }
  0x4d   :  { %1336 = vperm.xlu1 %2017, %v1706_v43  }
  0x50   :  { %1341 = vperm.xlu0 %2016, %v1707_v44  }
  0x51   :  { %1346 = vperm.xlu1 %2017, %v1708_v45  }
  0x54   :  { %1458 = vperm.xlu0 %2016, %v1715_v46  }
  0x55   :  { %1463 = vperm.xlu1 %2017, %v1716_v47  }
  0x83   :  { %v39_v49 = vpop.permute.xlu0 %38 }
  0x84   :  { %v49_v50 = vpop.permute.xlu1 %48 }
  0x87   :  { %v44_v51 = vpop.permute.xlu0 %43 }
  0x88   :  { %v54_v57 = vpop.permute.xlu1 %53 }
  0x8b   :  { %v170_v9 = vpop.permute.xlu0 %169 }
  0x8c   :  { %v175_v8 = vpop.permute.xlu1 %174 }
  0x8f   :  { %v180_v18 = vpop.permute.xlu0 %179 }
  0x90   :  { %v185_v15 = vpop.permute.xlu1 %184 }
  0x93   :  { %v302_v31 = vpop.permute.xlu0 %301 }
  0x94   :  { %v307_v30 = vpop.permute.xlu1 %306 }
  0x97   :  { %v312_v40 = vpop.permute.xlu0 %311 }
  0x98   :  { %v317_v37 = vpop.permute.xlu1 %316 }
  0xd7   :  { %v1804_v52 = vpop.f32.mrb[0].mxu0 }
  0xd8   :  { %v141_v53 = vadd.f32 %v1804_v52, %v44_v51  ;;  %v135_v54 = vpop.f32.mrb[1].mxu0  ;;  %v427_v51 = vpop.permute.xlu0 %426 }
  0xd9   :  { %v136_v55 = vadd.f32 %v135_v54, %v39_v49  ;;  %v1635_v49 = vld [vmem:[%s2470_s1 + $0x20] sm:$0xff] }
  0xda   :  { %v155_v56 = vmax.f32 %v141_v53, 0.0 }
  0xdb   :  { %v154_v58 = vmax.f32 %v136_v55, 0.0  ;;  %v1807_v59 = vpop.f32.mrb[2].mxu0 }
  0xdc   :  { %v151_v60 = vadd.f32 %v1807_v59, %v54_v57  ;;  %v145_v61 = vpop.f32.mrb[3].mxu0 }
  0xdd   :  { %v146_v62 = vadd.f32 %v145_v61, %v49_v50  ;;  %v1941_v63 = vpack.c.bf16 %v155_v56, %v154_v58 }
  0xde   :  { %v157_v1 = vmax.f32 %v151_v60, 0.0  ;;  %v432_v60 = vpop.permute.xlu1 %431 }
  0xdf   :  { %v156_v2 = vmax.f32 %v146_v62, 0.0  ;;  %1942 = vmatprep.subr.bf16.mxu1 %v1941_v63 }
  0xe0   :  { %1944 = vmatpush3.bf16.msra.mxu1 %v1941_v63 }
  0xe1   :  { %v1945_v3 = vpack.c.bf16 %v157_v1, %v156_v2 }
  0xe3   :  { %1946 = vmatprep.subr.bf16.mxu1 %v1945_v3 }
  0xe4   :  { %1948 = vmatpush3.bf16.msra.mxu1 %v1945_v3 }
  0xe7   :  { %1817 = vmatmul.mubr.msk.f32.vlgmr.msra.gmra.mrb[0].mxu1 %vm187_vm1, %v159_v4 }
  0xe8   :  { %1819 = vmatprep.mubr.msk.f32.mxu1 %vm187_vm1, %v160_v5 }
  0xeb   :  { %1820 = vmatmul.mubr.msk.f32.gmra.mrb[2].mxu1 %vm187_vm1, %v161_v6 }
  0xec   :  { %1844 = vmatprep.mubr.msk.f32.mxu1 %vm187_vm1, %v420_v29 }
 0x1ba   :  { %v1818_v10 = vpop.f32.mrb[0].mxu1 }
 0x1bb   :  { %v272_v11 = vadd.f32 %v1818_v10, %v175_v8  ;;  %v266_v12 = vpop.f32.mrb[1].mxu1 }
 0x1bc   :  { %v267_v13 = vadd.f32 %v266_v12, %v170_v9 }
 0x1bd   :  { %v286_v14 = vmax.f32 %v272_v11, 0.0 }
 0x1be   :  { %v285_v16 = vmax.f32 %v267_v13, 0.0  ;;  %v1821_v17 = vpop.f32.mrb[2].mxu1 }
 0x1bf   :  { %v282_v19 = vadd.f32 %v1821_v17, %v185_v15  ;;  %v276_v20 = vpop.f32.mrb[3].mxu1  ;;  %v1638_v15 = vld [vmem:[%s2470_s1 + $0x38] sm:$0xff]  ;;  %v559_v17 = vpop.permute.xlu1 %558 }
 0x1c0   :  { %v1949_v21 = vpack.c.bf16 %v286_v14, %v285_v16  ;;  %v277_v22 = vadd.f32 %v276_v20, %v180_v18  ;;  %v1636_v14 = vld [vmem:[%s2470_s1 + $0x28] sm:$0xff]  ;;  %v1647_v16 = vld [vmem:[%s2471_s2 + $0x40] sm:$0xff]  ;;  %v554_v18 = vpop.permute.xlu0 %553 }
 0x1c1   :  { %v288_v23 = vmax.f32 %v282_v19, 0.0 }
 0x1c2   :  { %v287_v24 = vmax.f32 %v277_v22, 0.0  ;;  %1950 = vmatprep.subr.bf16.mxu0 %v1949_v21 }
 0x1c3   :  { %1952 = vmatpush3.bf16.msra.mxu0 %v1949_v21 }
 0x1c4   :  { %v1953_v25 = vpack.c.bf16 %v288_v23, %v287_v24  ;;  %v569_v24 = vpop.permute.xlu1 %568 }
 0x1c6   :  { %1954 = vmatprep.subr.bf16.mxu0 %v1953_v25 }
 0x1c7   :  { %1956 = vmatpush3.bf16.msra.mxu0 %v1953_v25 }
 0x1ca   :  { %1831 = vmatmul.mubr.msk.f32.vlgmr.msra.gmra.mrb[4].mxu0 %vm187_vm1, %v1622_v26 }
 0x1cb   :  { %1833 = vmatprep.mubr.msk.f32.mxu0 %vm187_vm1, %v1623_v27  ;;  %v564_v27 = vpop.permute.xlu0 %563 }
 0x1ce   :  { %1834 = vmatmul.mubr.msk.f32.gmra.mrb[6].mxu0 %vm187_vm1, %v1624_v28 }
 0x1cf   :  { %1849 = vmatprep.mubr.msk.f32.mxu0 %vm56_vm0, %v1635_v49 }
 0x29d   :  { %v1832_v32 = vpop.f32.mrb[4].mxu0 }
 0x29e   :  { %v403_v33 = vadd.f32 %v1832_v32, %v307_v30  ;;  %v397_v34 = vpop.f32.mrb[5].mxu0 }
 0x29f   :  { %v398_v35 = vadd.f32 %v397_v34, %v302_v31 }
 0x2a0   :  { %v417_v36 = vmax.f32 %v403_v33, 0.0 }
 0x2a1   :  { %v416_v38 = vmax.f32 %v398_v35, 0.0  ;;  %v1835_v39 = vpop.f32.mrb[6].mxu0  ;;  %v1648_v35 = vld [vmem:[%s2471_s2 + $0x48] sm:$0xff] }
 0x2a2   :  { %v413_v41 = vadd.f32 %v1835_v39, %v317_v37  ;;  %v407_v42 = vpop.f32.mrb[7].mxu0  ;;  %v1650_v37 = vld [vmem:[%s2471_s2 + $0x58] sm:$0xff]  ;;  %v690_v39 = vpop.permute.xlu1 %689 }
 0x2a3   :  { %v1957_v43 = vpack.c.bf16 %v417_v36, %v416_v38  ;;  %v408_v44 = vadd.f32 %v407_v42, %v312_v40  ;;  %v1649_v36 = vld [vmem:[%s2471_s2 + $0x50] sm:$0xff]  ;;  %v1659_v38 = vld [vmem:[%s2471_s2 + $0x60] sm:$0xff]  ;;  %v685_v40 = vpop.permute.xlu0 %684 }
 0x2a4   :  { %v419_v45 = vmax.f32 %v413_v41, 0.0 }
 0x2a5   :  { %v418_v46 = vmax.f32 %v408_v44, 0.0  ;;  %1958 = vmatprep.subr.bf16.mxu1 %v1957_v43 }
 0x2a6   :  { %1960 = vmatpush3.bf16.msra.mxu1 %v1957_v43 }
 0x2a7   :  { %v1961_v47 = vpack.c.bf16 %v419_v45, %v418_v46  ;;  %v700_v46 = vpop.permute.xlu1 %699  ;;  %v695_v49 = vpop.permute.xlu0 %694 }
 0x2a9   :  { %1962 = vmatprep.subr.bf16.mxu1 %v1961_v47 }
 0x2aa   :  { %1964 = vmatpush3.bf16.msra.mxu1 %v1961_v47 }
 0x2ad   :  { %1845 = vmatmul.mubr.msk.f32.vlgmr.msra.gmra.mrb[4].mxu1 %vm187_vm1, %v421_v48 }
 0x2ae   :  { %1863 = vmatprep.mubr.msk.f32.mxu1 %vm187_vm1, %v1647_v16 }
 0x380   :  { %v1846_v50 = vpop.f32.mrb[4].mxu1 }
 0x381   :  { %v506_v52 = vpop.f32.mrb[5].mxu1  ;;  %v512_v61 = vadd.f32 %v1846_v50, %v432_v60  ;;  %v1671_v60 = vld [vmem:[%s2472_s3 + $0x10] sm:$0xff] }
 0x382   :  { %v507_v53 = vadd.f32 %v506_v52, %v427_v51 }
 0x383   :  { %v525_v5 = vsub.f32 %v2130_v0, %v512_v61  ;;  %v1637_v0 = vld [vmem:[%s2470_s1 + $0x30] sm:$0xff] }
 0x384   :  { %v515_v54 = vand.u32 2147483647, %v507_v53  ;;  %v528_v63 = vsub.f32 0.0, %v507_v53  ;;  %vm522_vm2 = vcmp.ge.f32.partialorder %v507_v53, 0.0 }
 0x386   :  { %v516_v55 = vsub.f32 0.0, %v515_v54  ;;  %v529_v8 = vmax.f32 %v528_v63, 0.0 }
 0x388   :  { %v517_v56 = vmul.f32 1.442695, %v516_v55 }
 0x38a   :  { %2018 = vpow2.f32 %v517_v56 }
 0x394   :  { %v2019_v57 = vpop.eup %2018 }
 0x395   :  { %v519_v58 = vadd.f32 1.0, %v2019_v57  ;;  %v533_v59 = vmul.f32 -0.5, %v2019_v57  ;;  %v536_v1 = vand.u32 2147483647, %v2019_v57 }
 0x397   :  { %2020 = vrcp.f32 %v519_v58  ;;  %v534_v62 = vadd.f32 1.0, %v533_v59  ;;  %vm537_vm3 = vcmp.lt.f32.partialorder %v536_v1, 0.0004427343  ;;  %v1662_v59 = vld [vmem:[%s2471_s2 + $0x78] sm:$0xff] }
 0x398   :  { %2022 = vlog2.f32 %v519_v58  ;;  %v1661_v58 = vld [vmem:[%s2471_s2 + $0x70] sm:$0xff] }
 0x399   :  { %v535_v7 = vmul.f32 %v2019_v57, %v534_v62  ;;  %v816_v62 = vpop.permute.xlu0 %815 }
 0x3a1   :  { %v2021_v2 = vpop.eup %2020 }
 0x3a2   :  { %v2023_v3 = vpop.eup %2022  ;;  %v523_v4 = vmul.f32 %v2021_v2, %v2019_v57  ;;  %v1660_v57 = vld [vmem:[%s2471_s2 + $0x68] sm:$0xff] }
 0x3a3   :  { %v532_v6 = vmul.f32 0.6931472, %v2023_v3 }
 0x3a4   :  { %v524_v9 = vsel %vm522_vm2, %v2021_v2, %v523_v4 }
 0x3a5   :  { %v538_v10 = vsel %vm537_vm3, %v535_v7, %v532_v6  ;;  %v526_v11 = vmul.f32 %v525_v5, %v524_v9 }
 0x3a6   :  { %v2321_v12 = vadd.f32 %v538_v10, %v529_v8  ;;  %v826_v8 = vpop.permute.xlu0 %825 }
 0x3a7   :  { %v2323_v13 = vadd.f32 %v526_v11, %v512_v61  ;;  %v821_v61 = vpop.permute.xlu1 %820 }
 0x3a9   :  { %1847 = vmatprep.subr.mxu0 %v2323_v13 }
 0x3aa   :  { %1848 = vmatpush3.msra.mxu0 %v2323_v13 }
 0x3ab   :  { %1850 = vmatmul.mubr.msk.f32.vlgmr.msra.gmra.mrb[8].mxu0 %vm56_vm0, %v1636_v14  ;;  %v831_v5 = vpop.permute.xlu1 %830 }
 0x3ac   :  { %1852 = vmatprep.mubr.msk.f32.mxu0 %vm56_vm0, %v1637_v0 }
 0x3af   :  { %1853 = vmatmul.mubr.msk.f32.gmra.mrb[10].mxu0 %vm56_vm0, %v1638_v15 }
 0x3b0   :  { %1877 = vmatprep.mubr.msk.f32.mxu0 %vm187_vm1, %v1659_v38 }
 0x47e   :  { %v1851_v19 = vpop.f32.mrb[8].mxu0 }
 0x47f   :  { %v655_v20 = vadd.f32 %v1851_v19, %v559_v17  ;;  %v649_v21 = vpop.f32.mrb[9].mxu0  ;;  %v1672_v17 = vld [vmem:[%s2472_s3 + $0x18] sm:$0xff] }
 0x480   :  { %v650_v22 = vadd.f32 %v649_v21, %v554_v18  ;;  %v1677_v18 = vld [vmem:[%s2470_s1 + $0x40] sm:$0xff] }
 0x481   :  { %v669_v23 = vmax.f32 %v655_v20, 0.0  ;;  %v943_v20 = vpop.permute.xlu0 %942 }
 0x482   :  { %v668_v25 = vmax.f32 %v650_v22, 0.0  ;;  %v1854_v26 = vpop.f32.mrb[10].mxu0 }
 0x483   :  { %v665_v28 = vadd.f32 %v1854_v26, %v569_v24  ;;  %v659_v29 = vpop.f32.mrb[11].mxu0 }
 0x484   :  { %v1965_v30 = vpack.c.bf16 %v669_v23, %v668_v25  ;;  %v660_v31 = vadd.f32 %v659_v29, %v564_v27  ;;  %v948_v29 = vpop.permute.xlu1 %947 }
 0x485   :  { %v671_v32 = vmax.f32 %v665_v28, 0.0 }
 0x486   :  { %v670_v33 = vmax.f32 %v660_v31, 0.0  ;;  %1966 = vmatprep.subr.bf16.mxu1 %v1965_v30 }
 0x487   :  { %1968 = vmatpush3.bf16.msra.mxu1 %v1965_v30 }
 0x488   :  { %v1969_v34 = vpack.c.bf16 %v671_v32, %v670_v33 }
 0x48a   :  { %1970 = vmatprep.subr.bf16.mxu1 %v1969_v34 }
 0x48b   :  { %1972 = vmatpush3.bf16.msra.mxu1 %v1969_v34 }
 0x48e   :  { %1864 = vmatmul.mubr.msk.f32.vlgmr.msra.gmra.mrb[6].mxu1 %vm187_vm1, %v1648_v35 }
 0x48f   :  { %1866 = vmatprep.mubr.msk.f32.mxu1 %vm187_vm1, %v1649_v36 }
 0x492   :  { %1867 = vmatmul.mubr.msk.f32.gmra.mrb[8].mxu1 %vm187_vm1, %v1650_v37 }
 0x493   :  { %1891 = vmatprep.mubr.msk.f32.mxu1 %vm187_vm1, %v1671_v60 }
 0x561   :  { %v1865_v41 = vpop.f32.mrb[6].mxu1 }
 0x562   :  { %v786_v42 = vadd.f32 %v1865_v41, %v690_v39  ;;  %v780_v43 = vpop.f32.mrb[7].mxu1 }
 0x563   :  { %v781_v44 = vadd.f32 %v780_v43, %v685_v40 }
 0x564   :  { %v800_v45 = vmax.f32 %v786_v42, 0.0 }
 0x565   :  { %v799_v47 = vmax.f32 %v781_v44, 0.0  ;;  %v1868_v48 = vpop.f32.mrb[8].mxu1 }
 0x566   :  { %v796_v50 = vadd.f32 %v1868_v48, %v700_v46  ;;  %v790_v51 = vpop.f32.mrb[9].mxu1  ;;  %v1689_v48 = vld [vmem:[%s2471_s2 + $0x80] sm:$0xff] }
 0x567   :  { %v1973_v52 = vpack.c.bf16 %v800_v45, %v799_v47  ;;  %v791_v53 = vadd.f32 %v790_v51, %v695_v49  ;;  %v1678_v47 = vld [vmem:[%s2470_s1 + $0x48] sm:$0xff]  ;;  %v1075_v49 = vpop.permute.xlu1 %1074 }
 0x568   :  { %v802_v54 = vmax.f32 %v796_v50, 0.0  ;;  %v1070_v50 = vpop.permute.xlu0 %1069 }
 0x569   :  { %v801_v55 = vmax.f32 %v791_v53, 0.0  ;;  %1974 = vmatprep.subr.bf16.mxu0 %v1973_v52 }
 0x56a   :  { %1976 = vmatpush3.bf16.msra.mxu0 %v1973_v52 }
 0x56b   :  { %v1977_v56 = vpack.c.bf16 %v802_v54, %v801_v55 }
 0x56d   :  { %1978 = vmatprep.subr.bf16.mxu0 %v1977_v56 }
 0x56e   :  { %1980 = vmatpush3.bf16.msra.mxu0 %v1977_v56  ;;  %v1085_v56 = vpop.permute.xlu1 %1084 }
 0x571   :  { %1878 = vmatmul.mubr.msk.f32.vlgmr.msra.gmra.mrb[12].mxu0 %vm187_vm1, %v1660_v57 }
 0x572   :  { %1880 = vmatprep.mubr.msk.f32.mxu0 %vm187_vm1, %v1661_v58 }
 0x575   :  { %1881 = vmatmul.mubr.msk.f32.gmra.mrb[14].mxu0 %vm187_vm1, %v1662_v59  ;;  %v1080_v59 = vpop.permute.xlu0 %1079 }
 0x576   :  { %1896 = vmatprep.mubr.msk.f32.mxu0 %vm56_vm0, %v1677_v18 }
 0x644   :  { %v1879_v63 = vpop.f32.mrb[12].mxu0 }
 0x645   :  { %v917_v1 = vadd.f32 %v1879_v63, %v821_v61  ;;  %v911_v2 = vpop.f32.mrb[13].mxu0 }
 0x646   :  { %v912_v3 = vadd.f32 %v911_v2, %v816_v62 }
 0x647   :  { %v931_v4 = vmax.f32 %v917_v1, 0.0 }
 0x648   :  { %v930_v6 = vmax.f32 %v912_v3, 0.0  ;;  %v1882_v7 = vpop.f32.mrb[14].mxu0 }
 0x649   :  { %v927_v9 = vadd.f32 %v1882_v7, %v831_v5  ;;  %v921_v10 = vpop.f32.mrb[15].mxu0  ;;  %v1691_v5 = vld [vmem:[%s2471_s2 + $0x90] sm:$0xff]  ;;  %v1701_v7 = vld [vmem:[%s2471_s2 + $0xa0] sm:$0xff] }
 0x64a   :  { %v1981_v11 = vpack.c.bf16 %v931_v4, %v930_v6  ;;  %v922_v14 = vadd.f32 %v921_v10, %v826_v8  ;;  %v1690_v4 = vld [vmem:[%s2471_s2 + $0x88] sm:$0xff]  ;;  %v1692_v6 = vld [vmem:[%s2471_s2 + $0x98] sm:$0xff]  ;;  %v1206_v8 = vpop.permute.xlu1 %1205 }
 0x64b   :  { %v933_v0 = vmax.f32 %v927_v9, 0.0  ;;  %v1201_v9 = vpop.permute.xlu0 %1200 }
 0x64c   :  { %v932_v15 = vmax.f32 %v922_v14, 0.0  ;;  %1982 = vmatprep.subr.bf16.mxu1 %v1981_v11 }
 0x64d   :  { %1984 = vmatpush3.bf16.msra.mxu1 %v1981_v11 }
 0x64e   :  { %v1985_v16 = vpack.c.bf16 %v933_v0, %v932_v15 }
 0x650   :  { %1986 = vmatprep.subr.bf16.mxu1 %v1985_v16 }
 0x651   :  { %1988 = vmatpush3.bf16.msra.mxu1 %v1985_v16  ;;  %v1216_v16 = vpop.permute.xlu1 %1215 }
 0x654   :  { %1892 = vmatmul.mubr.msk.f32.vlgmr.msra.gmra.mrb[10].mxu1 %vm187_vm1, %v1672_v17 }
 0x655   :  { %1910 = vmatprep.mubr.msk.f32.mxu1 %vm187_vm1, %v1689_v48 }
 0x727   :  { %v1893_v19 = vpop.f32.mrb[10].mxu1 }
 0x728   :  { %v1022_v21 = vpop.f32.mrb[11].mxu1  ;;  %v1028_v30 = vadd.f32 %v1893_v19, %v948_v29  ;;  %v1211_v19 = vpop.permute.xlu0 %1210  ;;  %v1704_v29 = vld [vmem:[%s2471_s2 + $0xb8] sm:$0xff] }
 0x729   :  { %v1023_v22 = vadd.f32 %v1022_v21, %v943_v20 }
 0x72a   :  { %v1041_v37 = vsub.f32 %v2323_v13, %v1028_v30  ;;  %v1679_v13 = vld [vmem:[%s2470_s1 + $0x50] sm:$0xff] }
 0x72b   :  { %v1031_v23 = vand.u32 2147483647, %v1023_v22  ;;  %v1044_v32 = vsub.f32 0.0, %v1023_v22  ;;  %vm1038_vm4 = vcmp.ge.f32.partialorder %v1023_v22, 0.0 }
 0x72d   :  { %v1032_v24 = vsub.f32 0.0, %v1031_v23  ;;  %v1045_v40 = vmax.f32 %v1044_v32, 0.0  ;;  %v1332_v32 = vpop.permute.xlu0 %1331 }
 0x72f   :  { %v1033_v25 = vmul.f32 1.442695, %v1032_v24 }
 0x731   :  { %2024 = vpow2.f32 %v1033_v25 }
 0x73b   :  { %v2025_v26 = vpop.eup %2024 }
 0x73c   :  { %v1035_v27 = vadd.f32 1.0, %v2025_v26  ;;  %v1049_v28 = vmul.f32 -0.5, %v2025_v26  ;;  %v1052_v33 = vand.u32 2147483647, %v2025_v26 }
 0x73e   :  { %2026 = vrcp.f32 %v1035_v27  ;;  %v1050_v31 = vadd.f32 1.0, %v1049_v28  ;;  %vm1053_vm5 = vcmp.lt.f32.partialorder %v1052_v33, 0.0004427343  ;;  %v1703_v28 = vld [vmem:[%s2471_s2 + $0xb0] sm:$0xff] }
 0x73f   :  { %2028 = vlog2.f32 %v1035_v27  ;;  %v1702_v27 = vld [vmem:[%s2471_s2 + $0xa8] sm:$0xff] }
 0x740   :  { %v1051_v39 = vmul.f32 %v2025_v26, %v1050_v31  ;;  %v1337_v31 = vpop.permute.xlu1 %1336 }
 0x748   :  { %v2027_v34 = vpop.eup %2026 }
 0x749   :  { %v2029_v35 = vpop.eup %2028  ;;  %v1039_v36 = vmul.f32 %v2027_v34, %v2025_v26 }
 0x74a   :  { %v1048_v38 = vmul.f32 0.6931472, %v2029_v35 }
 0x74b   :  { %v1040_v41 = vsel %vm1038_vm4, %v2027_v34, %v1039_v36 }
 0x74c   :  { %v1054_v42 = vsel %vm1053_vm5, %v1051_v39, %v1048_v38  ;;  %v1042_v43 = vmul.f32 %v1041_v37, %v1040_v41  ;;  %v1347_v38 = vpop.permute.xlu1 %1346  ;;  %v1342_v41 = vpop.permute.xlu0 %1341 }
 0x74d   :  { %v1055_v44 = vadd.f32 %v1054_v42, %v1045_v40 }
 0x74e   :  { %v2384_v45 = vadd.f32 %v1042_v43, %v1028_v30  ;;  %v1713_v30 = vld [vmem:[%s2472_s3 + $0x20] sm:$0xff] }
 0x74f   :  { %v2387_v46 = vadd.f32 %v1055_v44, %v2321_v12  ;;  %v1680_v12 = vld [vmem:[%s2470_s1 + $0x58] sm:$0xff] }
 0x750   :  { %1894 = vmatprep.subr.mxu0 %v2384_v45 }
 0x751   :  { %1895 = vmatpush3.msra.mxu0 %v2384_v45 }
 0x752   :  { %1897 = vmatmul.mubr.msk.f32.vlgmr.msra.gmra.mrb[16].mxu0 %vm56_vm0, %v1678_v47 }
 0x753   :  { %1899 = vmatprep.mubr.msk.f32.mxu0 %vm56_vm0, %v1679_v13 }
 0x756   :  { %1900 = vmatmul.mubr.msk.f32.gmra.mrb[18].mxu0 %vm56_vm0, %v1680_v12 }
 0x757   :  { %1924 = vmatprep.mubr.msk.f32.mxu0 %vm187_vm1, %v1701_v7 }
 0x825   :  { %v1898_v51 = vpop.f32.mrb[16].mxu0 }
 0x826   :  { %v1171_v52 = vadd.f32 %v1898_v51, %v1075_v49  ;;  %v1165_v53 = vpop.f32.mrb[17].mxu0  ;;  %v1714_v49 = vld [vmem:[%s2472_s3 + $0x28] sm:$0xff]  ;;  %v1459_v51 = vpop.permute.xlu0 %1458  ;;  %s2085_s3 = smov [#allocation2]  }
 0x827   :  { %v1166_v54 = vadd.f32 %v1165_v53, %v1070_v50  ;;  %s1587_s18 = sshll.u32 %s2085_s3, 4  ;;  %s1588_s18 = int_to_ptr.vmem [resolvable:$true] %s1587_s18 }
 0x828   :  { %v1185_v55 = vmax.f32 %v1171_v52, 0.0  ;;  %s2036_s19 = scalar_lea.vmem %s1588_s18, 128  ;;  %p2041_p1 = scmp.lt.s32.totalorder %s1588_s18, %s1588_s18 }
 0x829   :  { %v1184_v57 = vmax.f32 %v1166_v54, 0.0  ;;  %v1901_v58 = vpop.f32.mrb[18].mxu0  ;;  %p2037_p0 = scmp.ne.s32.totalorder %s1588_s18, %s2036_s19  ;;  %p2042_p2 = scmp.lt.s32.totalorder %s2036_s19, %s2036_s19 }
 0x82a   :  { %v1181_v60 = vadd.f32 %v1901_v58, %v1085_v56  ;;  %v1175_v61 = vpop.f32.mrb[19].mxu0 }
 0x82b   :  { %v1989_v62 = vpack.c.bf16 %v1185_v55, %v1184_v57  ;;  %v1176_v63 = vadd.f32 %v1175_v61, %v1080_v59  ;;  %v1464_v61 = vpop.permute.xlu1 %1463  ;;  %p2043_p3 = por %p2042_p2, %p2041_p1 }
 0x82c   :  { %v1187_v1 = vmax.f32 %v1181_v60, 0.0 }
 0x82d   :  { %v1186_v2 = vmax.f32 %v1176_v63, 0.0  ;;  %1990 = vmatprep.subr.bf16.mxu1 %v1989_v62  ;;  %p2044_p4 = pnand %p2043_p3, %p2037_p0 }
 0x82e   :  { %1992 = vmatpush3.bf16.msra.mxu1 %v1989_v62 }
 0x82f   :  { %v1993_v3 = vpack.c.bf16 %v1187_v1, %v1186_v2 }
 0x831   :  { %1994 = vmatprep.subr.bf16.mxu1 %v1993_v3 }
 0x832   :  { %1996 = vmatpush3.bf16.msra.mxu1 %v1993_v3 }
 0x835   :  { %1911 = vmatmul.mubr.msk.f32.vlgmr.msra.gmra.mrb[12].mxu1 %vm187_vm1, %v1690_v4 }
 0x836   :  { %1913 = vmatprep.mubr.msk.f32.mxu1 %vm187_vm1, %v1691_v5 }
 0x839   :  { %1914 = vmatmul.mubr.msk.f32.gmra.mrb[14].mxu1 %vm187_vm1, %v1692_v6 }
 0x83a   :  { %1938 = vmatprep.mubr.msk.f32.mxu1 %vm187_vm1, %v1713_v30 }
 0x908   :  { %v1912_v10 = vpop.f32.mrb[12].mxu1 }
 0x909   :  { %v1302_v11 = vadd.f32 %v1912_v10, %v1206_v8  ;;  %v1296_v14 = vpop.f32.mrb[13].mxu1 }
 0x90a   :  { %v1297_v0 = vadd.f32 %v1296_v14, %v1201_v9 }
 0x90b   :  { %v1316_v15 = vmax.f32 %v1302_v11, 0.0 }
 0x90c   :  { %v1315_v17 = vmax.f32 %v1297_v0, 0.0  ;;  %v1915_v18 = vpop.f32.mrb[14].mxu1 }
 0x90d   :  { %v1312_v20 = vadd.f32 %v1915_v18, %v1216_v16  ;;  %v1306_v21 = vpop.f32.mrb[15].mxu1 }
 0x90e   :  { %v1997_v22 = vpack.c.bf16 %v1316_v15, %v1315_v17  ;;  %v1307_v23 = vadd.f32 %v1306_v21, %v1211_v19 }
 0x90f   :  { %v1318_v24 = vmax.f32 %v1312_v20, 0.0 }
 0x910   :  { %v1317_v25 = vmax.f32 %v1307_v23, 0.0  ;;  %1998 = vmatprep.subr.bf16.mxu0 %v1997_v22 }
 0x911   :  { %2000 = vmatpush3.bf16.msra.mxu0 %v1997_v22 }
 0x912   :  { %v2001_v26 = vpack.c.bf16 %v1318_v24, %v1317_v25 }
 0x914   :  { %2002 = vmatprep.subr.bf16.mxu0 %v2001_v26 }
 0x915   :  { %2004 = vmatpush3.bf16.msra.mxu0 %v2001_v26 }
 0x918   :  { %1925 = vmatmul.mubr.msk.f32.vlgmr.msra.gmra.mrb[20].mxu0 %vm187_vm1, %v1702_v27 }
 0x919   :  { %1927 = vmatprep.mubr.msk.f32.mxu0 %vm187_vm1, %v1703_v28 }
 0x91c   :  { %1928 = vmatmul.mubr.msk.f32.gmra.mrb[22].mxu0 %vm187_vm1, %v1704_v29 }
 0x9eb   :  { %v1926_v33 = vpop.f32.mrb[20].mxu0 }
 0x9ec   :  { %v1433_v34 = vadd.f32 %v1926_v33, %v1337_v31  ;;  %v1427_v35 = vpop.f32.mrb[21].mxu0 }
 0x9ed   :  { %v1428_v36 = vadd.f32 %v1427_v35, %v1332_v32 }
 0x9ee   :  { %v1447_v37 = vmax.f32 %v1433_v34, 0.0 }
 0x9ef   :  { %v1446_v39 = vmax.f32 %v1428_v36, 0.0  ;;  %v1929_v40 = vpop.f32.mrb[22].mxu0 }
 0x9f0   :  { %v1443_v42 = vadd.f32 %v1929_v40, %v1347_v38  ;;  %v1437_v43 = vpop.f32.mrb[23].mxu0 }
 0x9f1   :  { %v2005_v44 = vpack.c.bf16 %v1447_v37, %v1446_v39  ;;  %v1438_v47 = vadd.f32 %v1437_v43, %v1342_v41 }
 0x9f2   :  { %v1449_v13 = vmax.f32 %v1443_v42, 0.0 }
 0x9f3   :  { %v1448_v12 = vmax.f32 %v1438_v47, 0.0  ;;  %2006 = vmatprep.subr.bf16.mxu1 %v2005_v44 }
 0x9f4   :  { %2008 = vmatpush3.bf16.msra.mxu1 %v2005_v44 }
 0x9f5   :  { %v2009_v48 = vpack.c.bf16 %v1449_v13, %v1448_v12 }
 0x9f7   :  { %2010 = vmatprep.subr.bf16.mxu1 %v2009_v48 }
 0x9f8   :  { %2012 = vmatpush3.bf16.msra.mxu1 %v2009_v48 }
 0x9fb   :  { %1939 = vmatmul.mubr.msk.f32.vlgmr.msra.gmra.mrb[16].mxu1 %vm187_vm1, %v1714_v49 }
 0xace   :  { %v1940_v50 = vpop.f32.mrb[16].mxu1 }
 0xacf   :  { %v1538_v52 = vpop.f32.mrb[17].mxu1  ;;  %v1544_v1 = vadd.f32 %v1940_v50, %v1464_v61 }
 0xad0   :  { %v1539_v53 = vadd.f32 %v1538_v52, %v1459_v51 }
 0xad1   :  { %v1557_v8 = vsub.f32 %v2384_v45, %v1544_v1 }
 0xad2   :  { %v1547_v54 = vand.u32 2147483647, %v1539_v53  ;;  %v1560_v62 = vsub.f32 0.0, %v1539_v53  ;;  %vm1554_vm7 = vcmp.ge.f32.partialorder %v1539_v53, 0.0 }
 0xad4   :  { %v1548_v55 = vsub.f32 0.0, %v1547_v54  ;;  %v1561_v6 = vmax.f32 %v1560_v62, 0.0 }
 0xad6   :  { %v1549_v56 = vmul.f32 1.442695, %v1548_v55 }
 0xad8   :  { %2030 = vpow2.f32 %v1549_v56 }
 0xae2   :  { %v2031_v57 = vpop.eup %2030 }
 0xae3   :  { %v1551_v58 = vadd.f32 1.0, %v2031_v57  ;;  %v1565_v59 = vmul.f32 -0.5, %v2031_v57  ;;  %v1568_v63 = vand.u32 2147483647, %v2031_v57 }
 0xae5   :  { %2032 = vlog2.f32 %v1551_v58  ;;  %v1566_v60 = vadd.f32 1.0, %v1565_v59  ;;  %vm1569_vm6 = vcmp.lt.f32.partialorder %v1568_v63, 0.0004427343 }
 0xae6   :  { %2034 = vrcp.f32 %v1551_v58 }
 0xae7   :  { %v1567_v5 = vmul.f32 %v2031_v57, %v1566_v60 }
 0xaef   :  { %v2033_v2 = vpop.eup %2032 }
 0xaf0   :  { %v2035_v3 = vpop.eup %2034  ;;  %v1564_v4 = vmul.f32 0.6931472, %v2033_v2 }
 0xaf1   :  { %v1555_v7 = vmul.f32 %v2035_v3, %v2031_v57 }
 0xaf2   :  { %v1570_v9 = vsel %vm1569_vm6, %v1567_v5, %v1564_v4 }
 0xaf3   :  { %v1571_v10 = vadd.f32 %v1570_v9, %v1561_v6  ;;  %v1556_v11 = vsel %vm1554_vm7, %v2035_v3, %v1555_v7 }
 0xaf4   :  { %v1558_v14 = vmul.f32 %v1557_v8, %v1556_v11 }
 0xaf5   :  { %v1572_v0 = vadd.f32 %v1571_v10, %v2387_v46 }
 0xaf6   :  { %v1559_v15 = vadd.f32 %v1558_v14, %v1544_v1 }
 0xaf7   :  { %v1574_v16 = vrot.slane %v1572_v0, 4 }
 0xaf8   :  { %1573 = vst [vmem:[#allocation2] sm:$0xff] %v1559_v15 }
 0xaf9   :  { %2047 = shalt.err (!%p2044_p4)
}
 0xafa   :  { %s2048_s22 = scalar_lea.hbm %s2475_s6, 128 }
 0xafb   :  { %p2049_p5 = scmp.ne.s32.totalorder %s2475_s6, %s2048_s22  ;;  %p2052_p6 = scmp.lt.u32.totalorder %s2048_s22, %s2475_s6 }
 0xafd   :  { %p2054_p7 = pnand %p2052_p6, %p2049_p5 }
 0xaff   :  { %2057 = shalt.err (!%p2054_p7)
}
 0xb00   :  { %1590 = dma.vmem_to_hbm [thread:$0]  %s1588_s18, 128, %s2475_s6, [#allocation3]   ;;  %v1575_v45 = vadd.f32 %v1574_v16, %v1572_v0 }
 0xb01   :  { %s2086_s26 = smov [#allocation4]  }
 0xb02   :  { %v1576_v46 = vrot.slane %v1575_v45, 2  ;;  %s1597_s27 = sshll.u32 %s2086_s26, 4  ;;  %s1598_s27 = int_to_ptr.vmem [resolvable:$true] %s1597_s27 }
 0xb03   :  { %s2058_s28 = scalar_lea.vmem %s1598_s27, 16  ;;  %s2062_s29 = scalar_lea.vmem %s1598_s27, 32 }
 0xb04   :  { %v1577_v17 = vadd.f32 %v1576_v46, %v1575_v45  ;;  %p2059_p8 = scmp.ne.s32.totalorder %s1598_s27, %s2058_s28  ;;  %p2063_p9 = scmp.lt.s32.totalorder %s1598_s27, %s1598_s27 }
 0xb05   :  { %p2064_p10 = scmp.lt.s32.totalorder %s2062_s29, %s2058_s28 }
 0xb06   :  { %v1578_v18 = vrot.slane %v1577_v17, 1 }
 0xb07   :  { %p2065_p11 = por %p2064_p10, %p2063_p9 }
 0xb08   :  { %v1579_v19 = vadd.f32 %v1578_v18, %v1577_v17 }
 0xb09   :  { %p2066_p12 = pnand %p2065_p11, %p2059_p8 }
 0xb0a   :  { %1580 = vst [vmem:[#allocation4] sm:$0x1] %v1579_v19 }
 0xb0b   :  { %2069 = shalt.err (!%p2066_p12)
}
 0xb0c   :  { %s2070_s6 = scalar_lea.hbm %s2476_s7, 16 }
 0xb0d   :  { %p2071_p13 = scmp.ne.s32.totalorder %s2476_s7, %s2070_s6  ;;  %p2074_p0 = scmp.lt.u32.totalorder %s2070_s6, %s2476_s7 }
 0xb0f   :  { %p2076_p1 = pnand %p2074_p0, %p2071_p13 }
 0xb11   :  { %2079 = shalt.err (!%p2076_p1)
}
 0xb12   :  { %1600 = dma.vmem_to_hbm [thread:$0]  %s1598_s27, 16, %s2476_s7, [#allocation5]  }
 0xb13   :  { %2080 = dma.done.wait [#allocation3], 128  }
 0xb14   :  { %2081 = vsyncadd [#allocation3], 4294967168 }
 0xb15   :  { %2082 = dma.done.wait [#allocation5], 16  }
 0xb16   :  { %2083 = vsyncadd [#allocation5], 4294967280 }
 0xb17   :  { %1607 = vsyncpa [#allocation3], 1 }
 0xb18   :  { %1608 = vsyncpa [#allocation5], 1 }

</bundles_post_ra>
